<compile_context>
chip_gen: v6e
topology: v6e:2x2x1
jax: 0.10.0
libtpu: 0.0.40
codegen_flags: <defaults>
</compile_context>

<pallas_src>
import functools

import jax
import jax.numpy as jnp
from jax.experimental import pallas as pl
from jax.experimental.pallas import tpu as pltpu


def _round_up(x: int, m: int) -> int:
    return ((x + m - 1) // m) * m


def _pred_kernel(h_ref, w_ref, b_ref, o_ref):
    # One MXU matmul (f32 accumulate) + f32 bias add + EUP sigmoid, all in VMEM.
    z = jnp.dot(h_ref[...], w_ref[...], preferred_element_type=jnp.float32)
    z = z + b_ref[...]          # bias broadcast over the batch tile (b is f32)
    o_ref[...] = jax.nn.sigmoid(z).astype(o_ref.dtype)


@functools.partial(jax.jit, static_argnames=("output_size", "tile_m", "compute_dtype"))
def latent_predictor_prap(h, w_t, b, output_size, *, tile_m=512,
                          compute_dtype=jnp.float32):
    """Forward pass of Latent_Predictor_prap.

    h:   [B, input_size]              activations
    w_t: [input_size, 2*output_size]  Linear weight, transposed vs. torch's [out, in]
    b:   [2*output_size]              Linear bias
    Returns (mu, sd), each [B, output_size], with z = sigmoid(h @ w_t + b),
    mu = z[:, :output_size], sd = z[:, output_size:].
    """
    B, in_dim = h.shape
    out2 = w_t.shape[1]

    # ---- pad feature dims to lane multiples (128) and batch to a tile multiple ----
    in_p = _round_up(in_dim, 128)
    out_p = _round_up(out2, 128)
    tm = min(tile_m, _round_up(B, 8))          # sublane-aligned batch tile
    b_p = _round_up(B, tm)

    h_pad = jnp.zeros((b_p, in_p), compute_dtype).at[:B, :in_dim].set(
        h.astype(compute_dtype))
    w_pad = jnp.zeros((in_p, out_p), compute_dtype).at[:in_dim, :out2].set(
        w_t.astype(compute_dtype))
    # bias stays f32 (added after f32 accumulation), kept as a [1, out_p] VMEM row
    b_pad = jnp.zeros((1, out_p), jnp.float32).at[0, :out2].set(
        b.astype(jnp.float32))

    grid = (b_p // tm,)
    z_pad = pl.pallas_call(
        _pred_kernel,
        out_shape=jax.ShapeDtypeStruct((b_p, out_p), jnp.float32),
        grid_spec=pl.GridSpec(
            grid=grid,
            in_specs=[
                pl.BlockSpec((tm, in_p), lambda i: (i, 0)),     # h tile
                pl.BlockSpec((in_p, out_p), lambda i: (0, 0)),  # W (full, resident)
                pl.BlockSpec((1, out_p), lambda i: (0, 0)),     # bias (resident)
            ],
            out_specs=pl.BlockSpec((tm, out_p), lambda i: (i, 0)),
        ),
        compiler_params=pltpu.CompilerParams(
            dimension_semantics=("parallel",)),
    )(h_pad, w_pad, b_pad)

    # drop batch/feature padding, then split into (mu, sd) as in the torch module
    z = z_pad[:B, :out2]
    mu = z[:, :output_size]
    sd = z[:, output_size:]
    return mu, sd


def _init_params(key, in_dim, out2):
    # Deterministic synthetic params matching torch nn.Linear init ranges;
    # weight kept in the transposed [in, out] layout used by the kernel.
    kw, kb = jax.random.split(key)
    s = 1.0 / jnp.sqrt(in_dim)
    w_t = jax.random.uniform(kw, (in_dim, out2), jnp.float32, -s, s)
    bias = jax.random.uniform(kb, (out2,), jnp.float32, -s, s)
    return w_t, bias


def _ref(h, w_t, bias, output_size):
    z = jax.nn.sigmoid(h @ w_t + bias)
    return z[:, :output_size], z[:, output_size:]


if __name__ == "__main__":
    key = jax.random.PRNGKey(0)
    kh, kp = jax.random.split(key)

    B, IN_DIM, OUT_DIM = 8, 400, 100            # small, non-128-aligned on purpose
    h = jax.random.normal(kh, (B, IN_DIM), jnp.float32)
    w_t, bias = _init_params(kp, IN_DIM, 2 * OUT_DIM)

    # f32 path (tight tolerance)
    mu, sd = latent_predictor_prap(h, w_t, bias, OUT_DIM)
    mu, sd = jax.block_until_ready((mu, sd))
    mu_ref, sd_ref = _ref(h, w_t, bias, OUT_DIM)
    assert mu.shape == (B, OUT_DIM) and sd.shape == (B, OUT_DIM)
    assert jnp.allclose(mu, mu_ref, atol=1e-4, rtol=1e-4), "mu mismatch (f32)"
    assert jnp.allclose(sd, sd_ref, atol=1e-4, rtol=1e-4), "sd mismatch (f32)"

    # bf16 MXU path (v6e/v7x): inputs/weights bf16, f32 accumulate, looser tolerance
    mu_bf, sd_bf = latent_predictor_prap(h, w_t, bias, OUT_DIM,
                                         compute_dtype=jnp.bfloat16)
    mu_bf, sd_bf = jax.block_until_ready((mu_bf, sd_bf))
    assert jnp.allclose(mu_bf, mu_ref, atol=2e-2, rtol=2e-2), "mu mismatch (bf16)"
    assert jnp.allclose(sd_bf, sd_ref, atol=2e-2, rtol=2e-2), "sd mismatch (bf16)"

    print("KERNEL_OK")
</pallas_src>

<mosaic_0001>
module attributes {stable_mosaic.version = 11 : i64} {
  func.func @_pred_kernel(%arg0: i32, %arg1: memref<8x512xf32, #tpu.memory_space<vmem>>, %arg2: memref<512x256xf32, #tpu.memory_space<vmem>>, %arg3: memref<1x256xf32, #tpu.memory_space<vmem>>, %arg4: memref<8x256xf32, #tpu.memory_space<vmem>>) attributes {dimension_semantics = [#tpu.dimension_semantics<parallel>], iteration_bounds = array<i64: 1>, scalar_prefetch = 0 : i64, scratch_operands = 0 : i64, tpu.core_type = #tpu.core_type<tc>, window_params = [{transform_indices = @transform_0, window_bounds = array<i64: 8, 512>}, {pipeline_mode = #tpu.pipeline_mode<synchronous>, transform_indices = @transform_1, window_bounds = array<i64: 512, 256>}, {pipeline_mode = #tpu.pipeline_mode<synchronous>, transform_indices = @transform_2, window_bounds = array<i64: 1, 256>}, {transform_indices = @transform_3, window_bounds = array<i64: 8, 256>}]} {
    %c0 = arith.constant 0 : index
    %c0_0 = arith.constant 0 : index
    %0 = vector.load %arg1[%c0, %c0_0] : memref<8x512xf32, #tpu.memory_space<vmem>>, vector<8x512xf32>
    %c0_1 = arith.constant 0 : index
    %c0_2 = arith.constant 0 : index
    %1 = vector.load %arg2[%c0_1, %c0_2] : memref<512x256xf32, #tpu.memory_space<vmem>>, vector<512x256xf32>
    %cst = arith.constant dense<0.000000e+00> : vector<8x256xf32>
    %2 = tpu.matmul %0, %1, %cst {dimension_numbers = #tpu.dot_dimension_numbers<[1], [0], [0], [1], [0, 0, 1, 1], [], []>} : vector<8x512xf32>, vector<512x256xf32>, vector<8x256xf32> -> vector<8x256xf32>
    %c0_3 = arith.constant 0 : index
    %c0_4 = arith.constant 0 : index
    %3 = vector.load %arg3[%c0_3, %c0_4] : memref<1x256xf32, #tpu.memory_space<vmem>>, vector<1x256xf32>
    %4 = vector.broadcast %3 : vector<1x256xf32> to vector<8x256xf32>
    %5 = arith.addf %2, %4 : vector<8x256xf32>
    %6 = arith.negf %5 : vector<8x256xf32>
    %7 = math.exp %6 : vector<8x256xf32>
    %cst_5 = arith.constant 1.000000e+00 : f32
    %8 = vector.broadcast %cst_5 : f32 to vector<8x256xf32>
    %9 = arith.addf %8, %7 : vector<8x256xf32>
    %10 = arith.divf %8, %9 : vector<8x256xf32>
    %c0_6 = arith.constant 0 : index
    %c0_7 = arith.constant 0 : index
    %11 = vector.load %arg4[%c0_6, %c0_7] : memref<8x256xf32, #tpu.memory_space<vmem>>, vector<8x256xf32>
    tpu.vector_store %arg4[%c0_6, %c0_7], %10 {strides = array<i32>} : memref<8x256xf32, #tpu.memory_space<vmem>>, vector<8x256xf32>,
    return
  }
  func.func @transform_0(%arg0: i32) -> (i32, i32) {
    %c0_i32 = arith.constant 0 : i32
    %c0_i32_0 = arith.constant 0 : i32
    return %arg0, %c0_i32 : i32, i32
  }
  func.func @transform_1(%arg0: i32) -> (i32, i32) {
    %c0_i32 = arith.constant 0 : i32
    %c0_i32_0 = arith.constant 0 : i32
    %c0_i32_1 = arith.constant 0 : i32
    return %c0_i32, %c0_i32_0 : i32, i32
  }
  func.func @transform_2(%arg0: i32) -> (i32, i32) {
    %c0_i32 = arith.constant 0 : i32
    %c0_i32_0 = arith.constant 0 : i32
    %c0_i32_1 = arith.constant 0 : i32
    return %c0_i32, %c0_i32_0 : i32, i32
  }
  func.func @transform_3(%arg0: i32) -> (i32, i32) {
    %c0_i32 = arith.constant 0 : i32
    %c0_i32_0 = arith.constant 0 : i32
    return %arg0, %c0_i32 : i32, i32
  }
}

</mosaic_0001>

<bundles_post_ra>
// kernel: latent_predictor_prap.1
= control target key start
LH: loop header
LB: loop body
LE: loop exit
PB: predicated region body
PF: predicated region fallthrough
CT: control target
= control target key end

     0   :  { %s753_s1 = inlined_call_operand.vmem [shape: f32[512,256], index: 1, kind: input, shape index: {}]   ;;  %s754_s0 = inlined_call_operand.vmem [shape: f32[8,512], index: 0, kind: input, shape index: {}]   ;;  %s755_s2 = inlined_call_operand.vmem [shape: f32[1,256], index: 2, kind: input, shape index: {}]   ;;  %s756_s3 = inlined_call_operand.vmem [shape: f32[8,256], index: 3, kind: output, shape index: {}]  }
   0x1   :  { %v49_v0 = vld [vmem:[%s753_s1 + $0xf8] sm:$0xff]  ;;  %v48_v2 = vld [vmem:[%s753_s1 + $0xf0] sm:$0xff]  ;;  %v47_v4 = vld [vmem:[%s753_s1 + $0xe8] sm:$0xff] }
   0x2   :  { %v113_v1 = vld [vmem:[%s753_s1 + $0x2f8] sm:$0xff]  ;;  %158 = vmatprep.subr.mxu0 %v49_v0  ;;  %v112_v3 = vld [vmem:[%s753_s1 + $0x2f0] sm:$0xff]  ;;  %v111_v5 = vld [vmem:[%s753_s1 + $0x2e8] sm:$0xff] }
   0x3   :  { %229 = vmatprep.subr.mxu1 %v113_v1  ;;  %159 = vmatpush1.msra.mxu0 %v48_v2  ;;  %v46_v6 = vld [vmem:[%s753_s1 + $0xe0] sm:$0xff]  ;;  %v45_v8 = vld [vmem:[%s753_s1 + $0xd8] sm:$0xff]  ;;  %v44_v10 = vld [vmem:[%s753_s1 + $0xd0] sm:$0xff] }
   0x4   :  { %230 = vmatpush1.msra.mxu1 %v112_v3  ;;  %v110_v7 = vld [vmem:[%s753_s1 + $0x2e0] sm:$0xff]  ;;  %160 = vmatprep.subr.mxu0 %v47_v4  ;;  %v109_v9 = vld [vmem:[%s753_s1 + $0x2d8] sm:$0xff]  ;;  %v108_v11 = vld [vmem:[%s753_s1 + $0x2d0] sm:$0xff] }
   0x5   :  { %231 = vmatprep.subr.mxu1 %v111_v5  ;;  %161 = vmatpush1.msra.mxu0 %v46_v6  ;;  %v43_v12 = vld [vmem:[%s753_s1 + $0xc8] sm:$0xff]  ;;  %v42_v14 = vld [vmem:[%s753_s1 + $0xc0] sm:$0xff]  ;;  %v41_v16 = vld [vmem:[%s753_s1 + $0xb8] sm:$0xff] }
   0x6   :  { %232 = vmatpush1.msra.mxu1 %v110_v7  ;;  %v107_v13 = vld [vmem:[%s753_s1 + $0x2c8] sm:$0xff]  ;;  %162 = vmatprep.subr.mxu0 %v45_v8  ;;  %v106_v15 = vld [vmem:[%s753_s1 + $0x2c0] sm:$0xff]  ;;  %v105_v17 = vld [vmem:[%s753_s1 + $0x2b8] sm:$0xff] }
   0x7   :  { %233 = vmatprep.subr.mxu1 %v109_v9  ;;  %163 = vmatpush1.msra.mxu0 %v44_v10  ;;  %v40_v18 = vld [vmem:[%s753_s1 + $0xb0] sm:$0xff]  ;;  %v39_v20 = vld [vmem:[%s753_s1 + $0xa8] sm:$0xff]  ;;  %v38_v22 = vld [vmem:[%s753_s1 + $0xa0] sm:$0xff] }
   0x8   :  { %234 = vmatpush1.msra.mxu1 %v108_v11  ;;  %164 = vmatprep.subr.mxu0 %v43_v12  ;;  %v104_v19 = vld [vmem:[%s753_s1 + $0x2b0] sm:$0xff]  ;;  %v103_v21 = vld [vmem:[%s753_s1 + $0x2a8] sm:$0xff]  ;;  %v102_v23 = vld [vmem:[%s753_s1 + $0x2a0] sm:$0xff] }
   0x9   :  { %235 = vmatprep.subr.mxu1 %v107_v13  ;;  %165 = vmatpush1.msra.mxu0 %v42_v14  ;;  %v37_v24 = vld [vmem:[%s753_s1 + $0x98] sm:$0xff]  ;;  %v36_v26 = vld [vmem:[%s753_s1 + $0x90] sm:$0xff]  ;;  %v35_v28 = vld [vmem:[%s753_s1 + $0x88] sm:$0xff] }
   0xa   :  { %236 = vmatpush1.msra.mxu1 %v106_v15  ;;  %166 = vmatprep.subr.mxu0 %v41_v16  ;;  %v101_v25 = vld [vmem:[%s753_s1 + $0x298] sm:$0xff]  ;;  %v100_v27 = vld [vmem:[%s753_s1 + $0x290] sm:$0xff]  ;;  %v99_v29 = vld [vmem:[%s753_s1 + $0x288] sm:$0xff] }
   0xb   :  { %237 = vmatprep.subr.mxu1 %v105_v17  ;;  %167 = vmatpush1.msra.mxu0 %v40_v18  ;;  %v34_v30 = vld [vmem:[%s753_s1 + $0x80] sm:$0xff]  ;;  %v33_v32 = vld [vmem:[%s753_s1 + $0x78] sm:$0xff]  ;;  %v32_v34 = vld [vmem:[%s753_s1 + $0x70] sm:$0xff] }
   0xc   :  { %238 = vmatpush1.msra.mxu1 %v104_v19  ;;  %168 = vmatprep.subr.mxu0 %v39_v20  ;;  %v98_v31 = vld [vmem:[%s753_s1 + $0x280] sm:$0xff]  ;;  %v97_v33 = vld [vmem:[%s753_s1 + $0x278] sm:$0xff]  ;;  %v96_v35 = vld [vmem:[%s753_s1 + $0x270] sm:$0xff] }
   0xd   :  { %239 = vmatprep.subr.mxu1 %v103_v21  ;;  %169 = vmatpush1.msra.mxu0 %v38_v22  ;;  %v31_v36 = vld [vmem:[%s753_s1 + $0x68] sm:$0xff]  ;;  %v30_v38 = vld [vmem:[%s753_s1 + $0x60] sm:$0xff]  ;;  %v29_v40 = vld [vmem:[%s753_s1 + $0x58] sm:$0xff] }
   0xe   :  { %240 = vmatpush1.msra.mxu1 %v102_v23  ;;  %170 = vmatprep.subr.mxu0 %v37_v24  ;;  %v95_v37 = vld [vmem:[%s753_s1 + $0x268] sm:$0xff]  ;;  %v94_v39 = vld [vmem:[%s753_s1 + $0x260] sm:$0xff]  ;;  %v93_v41 = vld [vmem:[%s753_s1 + $0x258] sm:$0xff] }
   0xf   :  { %241 = vmatprep.subr.mxu1 %v101_v25  ;;  %171 = vmatpush1.msra.mxu0 %v36_v26  ;;  %v28_v42 = vld [vmem:[%s753_s1 + $0x50] sm:$0xff]  ;;  %v27_v44 = vld [vmem:[%s753_s1 + $0x48] sm:$0xff]  ;;  %v26_v46 = vld [vmem:[%s753_s1 + $0x40] sm:$0xff] }
  0x10   :  { %242 = vmatpush1.msra.mxu1 %v100_v27  ;;  %172 = vmatprep.subr.mxu0 %v35_v28  ;;  %v92_v43 = vld [vmem:[%s753_s1 + $0x250] sm:$0xff]  ;;  %v91_v45 = vld [vmem:[%s753_s1 + $0x248] sm:$0xff]  ;;  %v90_v47 = vld [vmem:[%s753_s1 + $0x240] sm:$0xff] }
  0x11   :  { %243 = vmatprep.subr.mxu1 %v99_v29  ;;  %173 = vmatpush1.msra.mxu0 %v34_v30  ;;  %v25_v48 = vld [vmem:[%s753_s1 + $0x38] sm:$0xff]  ;;  %v24_v50 = vld [vmem:[%s753_s1 + $0x30] sm:$0xff]  ;;  %v23_v52 = vld [vmem:[%s753_s1 + $0x28] sm:$0xff] }
  0x12   :  { %244 = vmatpush1.msra.mxu1 %v98_v31  ;;  %174 = vmatprep.subr.mxu0 %v33_v32  ;;  %v89_v49 = vld [vmem:[%s753_s1 + $0x238] sm:$0xff]  ;;  %v88_v51 = vld [vmem:[%s753_s1 + $0x230] sm:$0xff]  ;;  %v87_v53 = vld [vmem:[%s753_s1 + $0x228] sm:$0xff] }
  0x13   :  { %245 = vmatprep.subr.mxu1 %v97_v33  ;;  %175 = vmatpush1.msra.mxu0 %v32_v34  ;;  %v22_v54 = vld [vmem:[%s753_s1 + $0x20] sm:$0xff]  ;;  %v21_v56 = vld [vmem:[%s753_s1 + $0x18] sm:$0xff]  ;;  %v20_v58 = vld [vmem:[%s753_s1 + $0x10] sm:$0xff] }
  0x14   :  { %246 = vmatpush1.msra.mxu1 %v96_v35  ;;  %176 = vmatprep.subr.mxu0 %v31_v36  ;;  %v86_v55 = vld [vmem:[%s753_s1 + $0x220] sm:$0xff]  ;;  %v85_v57 = vld [vmem:[%s753_s1 + $0x218] sm:$0xff]  ;;  %v84_v59 = vld [vmem:[%s753_s1 + $0x210] sm:$0xff] }
  0x15   :  { %247 = vmatprep.subr.mxu1 %v95_v37  ;;  %177 = vmatpush1.msra.mxu0 %v30_v38  ;;  %v19_v60 = vld [vmem:[%s753_s1 + $0x8] sm:$0xff]  ;;  %v18_v62 = vld [vmem:[%s753_s1] sm:$0xff]  ;;  %v81_v0 = vld [vmem:[%s753_s1 + $0x1f8] sm:$0xff] }
  0x16   :  { %248 = vmatpush1.msra.mxu1 %v94_v39  ;;  %178 = vmatprep.subr.mxu0 %v29_v40  ;;  %v83_v61 = vld [vmem:[%s753_s1 + $0x208] sm:$0xff]  ;;  %v82_v63 = vld [vmem:[%s753_s1 + $0x200] sm:$0xff]  ;;  %v145_v1 = vld [vmem:[%s753_s1 + $0x3f8] sm:$0xff] }
  0x17   :  { %249 = vmatprep.subr.mxu1 %v93_v41  ;;  %179 = vmatpush1.msra.mxu0 %v28_v42  ;;  %v80_v2 = vld [vmem:[%s753_s1 + $0x1f0] sm:$0xff]  ;;  %v79_v4 = vld [vmem:[%s753_s1 + $0x1e8] sm:$0xff]  ;;  %v78_v6 = vld [vmem:[%s753_s1 + $0x1e0] sm:$0xff] }
  0x18   :  { %250 = vmatpush1.msra.mxu1 %v92_v43  ;;  %180 = vmatprep.subr.mxu0 %v27_v44  ;;  %v144_v3 = vld [vmem:[%s753_s1 + $0x3f0] sm:$0xff]  ;;  %v143_v5 = vld [vmem:[%s753_s1 + $0x3e8] sm:$0xff]  ;;  %v142_v7 = vld [vmem:[%s753_s1 + $0x3e0] sm:$0xff] }
  0x19   :  { %251 = vmatprep.subr.mxu1 %v91_v45  ;;  %181 = vmatpush1.msra.mxu0 %v26_v46  ;;  %v77_v8 = vld [vmem:[%s753_s1 + $0x1d8] sm:$0xff]  ;;  %v76_v10 = vld [vmem:[%s753_s1 + $0x1d0] sm:$0xff]  ;;  %v75_v12 = vld [vmem:[%s753_s1 + $0x1c8] sm:$0xff] }
  0x1a   :  { %252 = vmatpush1.msra.mxu1 %v90_v47  ;;  %182 = vmatprep.subr.mxu0 %v25_v48  ;;  %v141_v9 = vld [vmem:[%s753_s1 + $0x3d8] sm:$0xff]  ;;  %v140_v11 = vld [vmem:[%s753_s1 + $0x3d0] sm:$0xff]  ;;  %v139_v13 = vld [vmem:[%s753_s1 + $0x3c8] sm:$0xff] }
  0x1b   :  { %253 = vmatprep.subr.mxu1 %v89_v49  ;;  %183 = vmatpush1.msra.mxu0 %v24_v50  ;;  %v74_v14 = vld [vmem:[%s753_s1 + $0x1c0] sm:$0xff]  ;;  %v73_v16 = vld [vmem:[%s753_s1 + $0x1b8] sm:$0xff]  ;;  %v72_v18 = vld [vmem:[%s753_s1 + $0x1b0] sm:$0xff] }
  0x1c   :  { %254 = vmatpush1.msra.mxu1 %v88_v51  ;;  %184 = vmatprep.subr.mxu0 %v23_v52  ;;  %v138_v15 = vld [vmem:[%s753_s1 + $0x3c0] sm:$0xff]  ;;  %v137_v17 = vld [vmem:[%s753_s1 + $0x3b8] sm:$0xff]  ;;  %v136_v19 = vld [vmem:[%s753_s1 + $0x3b0] sm:$0xff] }
  0x1d   :  { %255 = vmatprep.subr.mxu1 %v87_v53  ;;  %185 = vmatpush1.msra.mxu0 %v22_v54  ;;  %v71_v20 = vld [vmem:[%s753_s1 + $0x1a8] sm:$0xff]  ;;  %v70_v22 = vld [vmem:[%s753_s1 + $0x1a0] sm:$0xff]  ;;  %v69_v24 = vld [vmem:[%s753_s1 + $0x198] sm:$0xff] }
  0x1e   :  { %256 = vmatpush1.msra.mxu1 %v86_v55  ;;  %186 = vmatprep.subr.mxu0 %v21_v56  ;;  %v135_v21 = vld [vmem:[%s753_s1 + $0x3a8] sm:$0xff]  ;;  %v134_v23 = vld [vmem:[%s753_s1 + $0x3a0] sm:$0xff]  ;;  %v133_v25 = vld [vmem:[%s753_s1 + $0x398] sm:$0xff] }
  0x1f   :  { %257 = vmatprep.subr.mxu1 %v85_v57  ;;  %187 = vmatpush1.msra.mxu0 %v20_v58  ;;  %v68_v26 = vld [vmem:[%s753_s1 + $0x190] sm:$0xff]  ;;  %v67_v28 = vld [vmem:[%s753_s1 + $0x188] sm:$0xff]  ;;  %v66_v30 = vld [vmem:[%s753_s1 + $0x180] sm:$0xff] }
  0x20   :  { %258 = vmatpush1.msra.mxu1 %v84_v59  ;;  %188 = vmatprep.subr.mxu0 %v19_v60  ;;  %v132_v27 = vld [vmem:[%s753_s1 + $0x390] sm:$0xff]  ;;  %v131_v29 = vld [vmem:[%s753_s1 + $0x388] sm:$0xff]  ;;  %v130_v31 = vld [vmem:[%s753_s1 + $0x380] sm:$0xff] }
  0x21   :  { %259 = vmatprep.subr.mxu1 %v83_v61  ;;  %189 = vmatpush1.msra.mxu0 %v18_v62  ;;  %v65_v32 = vld [vmem:[%s753_s1 + $0x178] sm:$0xff]  ;;  %v64_v34 = vld [vmem:[%s753_s1 + $0x170] sm:$0xff]  ;;  %v63_v36 = vld [vmem:[%s753_s1 + $0x168] sm:$0xff] }
  0x22   :  { %260 = vmatpush1.msra.mxu1 %v82_v63  ;;  %190 = vmatprep.subr.mxu0 %v81_v0  ;;  %v129_v33 = vld [vmem:[%s753_s1 + $0x378] sm:$0xff]  ;;  %v128_v35 = vld [vmem:[%s753_s1 + $0x370] sm:$0xff]  ;;  %v127_v37 = vld [vmem:[%s753_s1 + $0x368] sm:$0xff] }
  0x23   :  { %261 = vmatprep.subr.mxu1 %v145_v1  ;;  %191 = vmatpush2.msra.mxu0 %v80_v2  ;;  %v62_v38 = vld [vmem:[%s753_s1 + $0x160] sm:$0xff]  ;;  %v61_v40 = vld [vmem:[%s753_s1 + $0x158] sm:$0xff]  ;;  %v60_v42 = vld [vmem:[%s753_s1 + $0x150] sm:$0xff] }
  0x24   :  { %262 = vmatpush2.msra.mxu1 %v144_v3  ;;  %192 = vmatprep.subr.mxu0 %v79_v4  ;;  %v126_v39 = vld [vmem:[%s753_s1 + $0x360] sm:$0xff]  ;;  %v125_v41 = vld [vmem:[%s753_s1 + $0x358] sm:$0xff]  ;;  %v124_v43 = vld [vmem:[%s753_s1 + $0x350] sm:$0xff]  ;;  %v148_v4 = vlaneseq }
  0x25   :  { %263 = vmatprep.subr.mxu1 %v143_v5  ;;  %193 = vmatpush2.msra.mxu0 %v78_v6  ;;  %v59_v44 = vld [vmem:[%s753_s1 + $0x148] sm:$0xff]  ;;  %v58_v46 = vld [vmem:[%s753_s1 + $0x140] sm:$0xff]  ;;  %v57_v48 = vld [vmem:[%s753_s1 + $0x138] sm:$0xff] }
  0x26   :  { %264 = vmatpush2.msra.mxu1 %v142_v7  ;;  %194 = vmatprep.subr.mxu0 %v77_v8  ;;  %v123_v45 = vld [vmem:[%s753_s1 + $0x348] sm:$0xff]  ;;  %v122_v47 = vld [vmem:[%s753_s1 + $0x340] sm:$0xff]  ;;  %v121_v49 = vld [vmem:[%s753_s1 + $0x338] sm:$0xff]  ;;  %v149_v5 = vshrl.u32 %v148_v4, 7 }
  0x27   :  { %265 = vmatprep.subr.mxu1 %v141_v9  ;;  %195 = vmatpush2.msra.mxu0 %v76_v10  ;;  %v56_v50 = vld [vmem:[%s753_s1 + $0x130] sm:$0xff]  ;;  %v55_v52 = vld [vmem:[%s753_s1 + $0x128] sm:$0xff]  ;;  %v54_v54 = vld [vmem:[%s753_s1 + $0x120] sm:$0xff] }
  0x28   :  { %266 = vmatpush2.msra.mxu1 %v140_v11  ;;  %196 = vmatprep.subr.mxu0 %v75_v12  ;;  %v120_v51 = vld [vmem:[%s753_s1 + $0x330] sm:$0xff]  ;;  %v119_v53 = vld [vmem:[%s753_s1 + $0x328] sm:$0xff]  ;;  %v118_v55 = vld [vmem:[%s753_s1 + $0x320] sm:$0xff]  ;;  %v150_v6 = vsub.s32 0, %v149_v5  ;;  %v154_v8 = vsub.s32 1, %v149_v5 }
  0x29   :  { %267 = vmatprep.subr.mxu1 %v139_v13  ;;  %197 = vmatpush2.msra.mxu0 %v74_v14  ;;  %v53_v56 = vld [vmem:[%s753_s1 + $0x118] sm:$0xff]  ;;  %v52_v58 = vld [vmem:[%s753_s1 + $0x110] sm:$0xff]  ;;  %v51_v60 = vld [vmem:[%s753_s1 + $0x108] sm:$0xff] }
  0x2a   :  { %268 = vmatpush2.msra.mxu1 %v138_v15  ;;  %198 = vmatprep.subr.mxu0 %v73_v16  ;;  %v117_v57 = vld [vmem:[%s753_s1 + $0x318] sm:$0xff]  ;;  %v116_v59 = vld [vmem:[%s753_s1 + $0x310] sm:$0xff]  ;;  %v115_v61 = vld [vmem:[%s753_s1 + $0x308] sm:$0xff] }
  0x2b   :  { %269 = vmatprep.subr.mxu1 %v137_v17  ;;  %199 = vmatpush2.msra.mxu0 %v72_v18  ;;  %v50_v62 = vld [vmem:[%s753_s1 + $0x100] sm:$0xff]  ;;  %v15_v63 = vld [vmem:[%s754_s0 + $0x8] sm:$0xff]  ;;  %v17_v1 = vld [vmem:[%s754_s0 + $0x18] sm:$0xff] }
  0x2c   :  { %270 = vmatpush2.msra.mxu1 %v136_v19  ;;  %200 = vmatprep.subr.mxu0 %v71_v20  ;;  %v114_v0 = vld [vmem:[%s753_s1 + $0x300] sm:$0xff]  ;;  %v16_v3 = vld [vmem:[%s754_s0 + $0x10] sm:$0xff] }
  0x2d   :  { %271 = vmatprep.subr.mxu1 %v135_v21  ;;  %201 = vmatpush2.msra.mxu0 %v70_v22  ;;  %v14_v2 = vld [vmem:[%s754_s0] sm:$0xff] }
  0x2e   :  { %272 = vmatpush2.msra.mxu1 %v134_v23  ;;  %202 = vmatprep.subr.mxu0 %v69_v24  ;;  %v146_v7 = vld [vmem:[%s755_s2] sm:$0x3] }
  0x2f   :  { %273 = vmatprep.subr.mxu1 %v133_v25  ;;  %203 = vmatpush2.msra.mxu0 %v68_v26  ;;  %v151_v9 = vrot.slane %v146_v7, %v150_v6  ;;  %v155_v10 = vrot.slane %v146_v7, %v154_v8 }
  0x30   :  { %274 = vmatpush2.msra.mxu1 %v132_v27  ;;  %204 = vmatprep.subr.mxu0 %v67_v28 }
  0x31   :  { %275 = vmatprep.subr.mxu1 %v131_v29  ;;  %205 = vmatpush2.msra.mxu0 %v66_v30 }
  0x32   :  { %276 = vmatpush2.msra.mxu1 %v130_v31  ;;  %206 = vmatprep.subr.mxu0 %v65_v32 }
  0x33   :  { %277 = vmatprep.subr.mxu1 %v129_v33  ;;  %207 = vmatpush2.msra.mxu0 %v64_v34 }
  0x34   :  { %278 = vmatpush2.msra.mxu1 %v128_v35  ;;  %208 = vmatprep.subr.mxu0 %v63_v36 }
  0x35   :  { %279 = vmatprep.subr.mxu1 %v127_v37  ;;  %209 = vmatpush2.msra.mxu0 %v62_v38 }
  0x36   :  { %280 = vmatpush2.msra.mxu1 %v126_v39  ;;  %210 = vmatprep.subr.mxu0 %v61_v40 }
  0x37   :  { %281 = vmatprep.subr.mxu1 %v125_v41  ;;  %211 = vmatpush2.msra.mxu0 %v60_v42 }
  0x38   :  { %282 = vmatpush2.msra.mxu1 %v124_v43  ;;  %212 = vmatprep.subr.mxu0 %v59_v44 }
  0x39   :  { %283 = vmatprep.subr.mxu1 %v123_v45  ;;  %213 = vmatpush2.msra.mxu0 %v58_v46 }
  0x3a   :  { %284 = vmatpush2.msra.mxu1 %v122_v47  ;;  %214 = vmatprep.subr.mxu0 %v57_v48 }
  0x3b   :  { %285 = vmatprep.subr.mxu1 %v121_v49  ;;  %215 = vmatpush2.msra.mxu0 %v56_v50 }
  0x3c   :  { %286 = vmatpush2.msra.mxu1 %v120_v51  ;;  %216 = vmatprep.subr.mxu0 %v55_v52 }
  0x3d   :  { %287 = vmatprep.subr.mxu1 %v119_v53  ;;  %217 = vmatpush2.msra.mxu0 %v54_v54 }
  0x3e   :  { %288 = vmatpush2.msra.mxu1 %v118_v55  ;;  %218 = vmatprep.subr.mxu0 %v53_v56 }
  0x3f   :  { %289 = vmatprep.subr.mxu1 %v117_v57  ;;  %219 = vmatpush2.msra.mxu0 %v52_v58 }
  0x40   :  { %290 = vmatpush2.msra.mxu1 %v116_v59  ;;  %220 = vmatprep.subr.mxu0 %v51_v60 }
  0x41   :  { %291 = vmatprep.subr.mxu1 %v115_v61  ;;  %221 = vmatpush2.msra.mxu0 %v50_v62 }
  0x42   :  { %222 = vmatprep.mubr.f32.mxu0 %v15_v63  ;;  %292 = vmatpush2.msra.mxu1 %v114_v0 }
  0x43   :  { %293 = vmatprep.mubr.f32.mxu1 %v17_v1  ;;  %223 = vmatmul.mubr.f32.vlgmr.msra.gmra.mxu0 %v14_v2 }
  0x44   :  { %294 = vmatmul.mubr.f32.vlgmr.msra.gmra.mxu1 %v16_v3 }
 0x103   :  { %v224_v11 = vpop.f32.mrf.mxu0 }
 0x104   :  { %v295_v12 = vpop.f32.mrf.mxu1  ;;  %v225_v13 = vadd.f32 %v224_v11, %v151_v9 }
 0x105   :  { %v226_v14 = vpop.f32.mrf.mxu0 }
 0x106   :  { %v296_v15 = vadd.f32 %v295_v12, %v225_v13  ;;  %v227_v16 = vadd.f32 %v226_v14, %v155_v10  ;;  %v297_v17 = vpop.f32.mrf.mxu1 }
 0x108   :  { %v318_v18 = vmul.f32 -1.442695, %v296_v15  ;;  %v298_v19 = vadd.f32 %v297_v17, %v227_v16 }
 0x10a   :  { %320 = vpow2.f32 %v318_v18  ;;  %v319_v20 = vmul.f32 -1.442695, %v298_v19 }
 0x10c   :  { %322 = vpow2.f32 %v319_v20 }
 0x117   :  { %v321_v21 = vpop.eup %320 }
 0x118   :  { %v306_v22 = vadd.f32 1.0, %v321_v21 }
 0x119   :  { %v323_v23 = vpop.eup %322 }
 0x11a   :  { %324 = vrcp.f32 %v306_v22  ;;  %v307_v24 = vadd.f32 1.0, %v323_v23 }
 0x11c   :  { %326 = vrcp.f32 %v307_v24 }
 0x127   :  { %v325_v25 = vpop.eup %324 }
 0x128   :  { %312 = vst [vmem:[%s756_s3] sm:$0xff] %v325_v25 }
 0x129   :  { %v327_v26 = vpop.eup %326 }
 0x12a   :  { %313 = vst [vmem:[%s756_s3 + $0x8] sm:$0xff] %v327_v26 }

</bundles_post_ra>
